<compile_context>
chip_gen: v6e
topology: v6e:2x2x1
jax: 0.10.0
libtpu: 0.0.40
codegen_flags: <defaults>
</compile_context>

<pallas_src>
import functools

import jax
import jax.numpy as jnp
from jax.experimental import pallas as pl
from jax.experimental.pallas import tpu as pltpu


def _round_up(a, b):
    return (a + b - 1) // b * b


def _gap_kernel(x_ref, o_ref, acc_ref, *, inv_hw):
    k = pl.program_id(1)

    @pl.when(k == 0)
    def _init():
        acc_ref[...] = jnp.zeros_like(acc_ref)

    # Partial reduction over this HW tile, accumulated in f32.
    acc_ref[...] += jnp.sum(x_ref[...], axis=-1, keepdims=True,
                            dtype=jnp.float32)

    @pl.when(k == pl.num_programs(1) - 1)
    def _finalize():
        o_ref[...] = (acc_ref[...] * inv_hw).astype(o_ref.dtype)


def global_average_pool2d(x):
    """Mean over the last two (spatial) dims, matching the PyTorch module."""
    assert x.ndim >= 2
    x_shape = x.shape
    H, W = x_shape[-2], x_shape[-1]
    hw = H * W
    rows = 1
    for d in x_shape[:-2]:
        rows *= d

    itemsize = jnp.dtype(x.dtype).itemsize

    # ---- Tile selection (sized for the smallest per-generation VMEM) --------
    TILE_BYTES = 8 * 1024 * 1024      # per input buffer (x2 for double-buffering)
    MAX_ROWS_BLOCK = 2048

    # HW (reduction) tile: full 128-padded extent unless that would force the
    # row tile below 8 rows; always a multiple of 128.
    max_hw_block = max(128, (TILE_BYTES // (8 * itemsize)) // 128 * 128)
    hw_block = min(_round_up(hw, 128), max_hw_block)
    hw_padded = _round_up(hw, hw_block)

    # Row tile: as many rows as fit the per-buffer budget, multiple of 8.
    rows_block = TILE_BYTES // (hw_block * itemsize)
    rows_block = max(8, (rows_block // 8) * 8)
    rows_block = min(rows_block, MAX_ROWS_BLOCK, _round_up(rows, 8))
    # Prefer >= 2 row blocks so the 'parallel' axis can be split across
    # TensorCores (v7x megacore) when the problem is big enough.
    if rows >= 16 and _round_up(rows, rows_block) // rows_block < 2:
        rows_block = _round_up(pl.cdiv(rows, 2), 8)
    rows_padded = _round_up(rows, rows_block)

    x2 = x.reshape(rows, hw)
    if rows_padded != rows or hw_padded != hw:
        x2 = jnp.pad(x2, ((0, rows_padded - rows), (0, hw_padded - hw)))

    grid = (rows_padded // rows_block, hw_padded // hw_block)

    out = pl.pallas_call(
        functools.partial(_gap_kernel, inv_hw=1.0 / hw),
        out_shape=jax.ShapeDtypeStruct((rows_padded, 1), x.dtype),
        grid_spec=pltpu.PrefetchScalarGridSpec(
            num_scalar_prefetch=0,
            grid=grid,
            in_specs=[pl.BlockSpec((rows_block, hw_block), lambda i, k: (i, k))],
            out_specs=pl.BlockSpec((rows_block, 1), lambda i, k: (i, 0)),
            scratch_shapes=[pltpu.VMEM((rows_block, 1), jnp.float32)],
        ),
        compiler_params=pltpu.CompilerParams(
            dimension_semantics=("parallel", "arbitrary"),
            vmem_limit_bytes=48 * 1024 * 1024,
        ),
    )(x2)

    out = out[:rows]
    # view(*x_size[:-3], -1)
    out_shape = x_shape[:-3] + (-1,) if x.ndim >= 3 else (-1,)
    return out.reshape(*out_shape)


if __name__ == "__main__":
    key = jax.random.PRNGKey(0)

    # Primary check: NCHW input (2, 4, 16, 16).
    x = jax.random.normal(key, (2, 4, 16, 16), dtype=jnp.float32)
    y = global_average_pool2d(x)
    jax.block_until_ready(y)
    ref = x.reshape(2, 4, -1).mean(axis=-1).reshape(2, -1)
    assert y.shape == (2, 4), y.shape
    assert jnp.allclose(y, ref, atol=1e-5, rtol=1e-5)

    # Secondary check: odd shape exercising the row/HW padding paths.
    x2 = jax.random.normal(jax.random.PRNGKey(1), (3, 5, 7, 7), dtype=jnp.float32)
    y2 = global_average_pool2d(x2)
    jax.block_until_ready(y2)
    ref2 = x2.reshape(3, 5, -1).mean(axis=-1).reshape(3, -1)
    assert y2.shape == (3, 5), y2.shape
    assert jnp.allclose(y2, ref2, atol=1e-5, rtol=1e-5)

    print("KERNEL_OK")
</pallas_src>

<mosaic_0001>
module attributes {stable_mosaic.version = 11 : i64} {
  func.func @_gap_kernel(%arg0: i32, %arg1: i32, %arg2: memref<8x256xf32, #tpu.memory_space<vmem>>, %arg3: memref<8x1xf32, #tpu.memory_space<vmem>>, %arg4: memref<8x1xf32, #tpu.memory_space<vmem>>) attributes {dimension_semantics = [#tpu.dimension_semantics<parallel>, #tpu.dimension_semantics<arbitrary>], iteration_bounds = array<i64: 1, 1>, scalar_prefetch = 0 : i64, scratch_operands = 1 : i64, tpu.core_type = #tpu.core_type<tc>, window_params = [{transform_indices = @transform_0, window_bounds = array<i64: 8, 256>}, {transform_indices = @transform_1, window_bounds = array<i64: 8, 1>}]} {
    %c0_i32 = arith.constant 0 : i32
    %0 = arith.cmpi eq, %arg1, %c0_i32 : i32
    %1 = arith.extui %0 : i1 to i32
    %c0_i32_0 = arith.constant 0 : i32
    %2 = arith.cmpi ne, %1, %c0_i32_0 : i32
    scf.if %2 {
      %cst_8 = arith.constant 0.000000e+00 : f32
      %12 = vector.broadcast %cst_8 : f32 to vector<8x1xf32>
      %c0_9 = arith.constant 0 : index
      %c0_10 = arith.constant 0 : index
      %13 = vector.load %arg4[%c0_9, %c0_10] : memref<8x1xf32, #tpu.memory_space<vmem>>, vector<8x1xf32>
      tpu.vector_store %arg4[%c0_9, %c0_10], %12 {strides = array<i32>} : memref<8x1xf32, #tpu.memory_space<vmem>>, vector<8x1xf32>,
    } else {
    }
    %c0 = arith.constant 0 : index
    %c0_1 = arith.constant 0 : index
    %3 = vector.load %arg4[%c0, %c0_1] : memref<8x1xf32, #tpu.memory_space<vmem>>, vector<8x1xf32>
    %c0_2 = arith.constant 0 : index
    %c0_3 = arith.constant 0 : index
    %4 = vector.load %arg2[%c0_2, %c0_3] : memref<8x256xf32, #tpu.memory_space<vmem>>, vector<8x256xf32>
    %cst = arith.constant dense<0.000000e+00> : vector<8xf32>
    %5 = vector.multi_reduction <add>, %4, %cst [1] : vector<8x256xf32> to vector<8xf32>
    %6 = vector.shape_cast %5 : vector<8xf32> to vector<8x1xf32>
    %7 = arith.addf %3, %6 : vector<8x1xf32>
    %c0_4 = arith.constant 0 : index
    %c0_5 = arith.constant 0 : index
    %8 = vector.load %arg4[%c0_4, %c0_5] : memref<8x1xf32, #tpu.memory_space<vmem>>, vector<8x1xf32>
    tpu.vector_store %arg4[%c0_4, %c0_5], %7 {strides = array<i32>} : memref<8x1xf32, #tpu.memory_space<vmem>>, vector<8x1xf32>,
    %c0_i32_6 = arith.constant 0 : i32
    %9 = arith.cmpi eq, %arg1, %c0_i32_6 : i32
    %10 = arith.extui %9 : i1 to i32
    %c0_i32_7 = arith.constant 0 : i32
    %11 = arith.cmpi ne, %10, %c0_i32_7 : i32
    scf.if %11 {
      %c0_8 = arith.constant 0 : index
      %c0_9 = arith.constant 0 : index
      %12 = vector.load %arg4[%c0_8, %c0_9] : memref<8x1xf32, #tpu.memory_space<vmem>>, vector<8x1xf32>
      %cst_10 = arith.constant 3.906250e-03 : f32
      %13 = vector.broadcast %cst_10 : f32 to vector<8x1xf32>
      %14 = arith.mulf %12, %13 : vector<8x1xf32>
      %c0_11 = arith.constant 0 : index
      %c0_12 = arith.constant 0 : index
      %15 = vector.load %arg3[%c0_11, %c0_12] : memref<8x1xf32, #tpu.memory_space<vmem>>, vector<8x1xf32>
      tpu.vector_store %arg3[%c0_11, %c0_12], %14 {strides = array<i32>} : memref<8x1xf32, #tpu.memory_space<vmem>>, vector<8x1xf32>,
    } else {
    }
    return
  }
  func.func @transform_0(%arg0: i32, %arg1: i32) -> (i32, i32) {
    %c0_i32 = arith.constant 0 : i32
    return %arg0, %arg1 : i32, i32
  }
  func.func @transform_1(%arg0: i32, %arg1: i32) -> (i32, i32) {
    %c0_i32 = arith.constant 0 : i32
    %c0_i32_0 = arith.constant 0 : i32
    return %arg0, %c0_i32 : i32, i32
  }
}

</mosaic_0001>

<bundles_post_ra>
// kernel: tpu_custom_call.1
= control target key start
LH: loop header
LB: loop body
LE: loop exit
PB: predicated region body
PF: predicated region fallthrough
CT: control target
= control target key end

     0   :  { %6 = vsyncpa [#allocation4], 0  ;;  %s70_s6 = smov [#allocation3]   ;;  %s88_s0 = inlined_call_operand.hbm [shape: f32[8,256], index: 0, kind: input, shape index: {}]   ;;  %s89_s1 = inlined_call_operand.vmem [shape: f32[8,1], index: 1, kind: output, shape index: {}]  }
   0x1   :  { %s13_s7 = sshll.u32 %s70_s6, 4  ;;  %s14_s7 = int_to_ptr.vmem [resolvable:$true] %s13_s7 }
   0x2   :  { %s56_s8 = scalar_lea.vmem %s14_s7, 256  ;;  %p61_p1 = scmp.lt.s32.totalorder %s14_s7, %s14_s7 }
   0x3   :  { %p57_p0 = scmp.ne.s32.totalorder %s14_s7, %s56_s8  ;;  %p62_p2 = scmp.lt.s32.totalorder %s56_s8, %s56_s8 }
   0x5   :  { %p63_p3 = por %p62_p2, %p61_p1 }
   0x7   :  { %p64_p4 = pnand %p63_p3, %p57_p0 }
   0x9   :  { %67 = shalt.err (!%p64_p4)
}
   0xa   :  { %16 = dma.hbm_to_vmem [thread:$0]  %s88_s0, 256, %s14_s7, [#allocation4]  }
   0xb   :  { %68 = dma.done.wait [#allocation4], 256  }
   0xc   :  { %69 = vsyncadd [#allocation4], 4294967040  ;;  %vm24_vm0 = vcmask 7168   ;;  %v71_v0 = vmov 0.0   ;;  %v27_v1 = vld [vmem:[#allocation3] sm:$0xff]  ;;  %v28_v2 = vld [vmem:[#allocation3 + $0x8] sm:$0xff] }
   0xd   :  { %25 = vst.msk [vmem:[#allocation2] sm:$0xff] %vm24_vm0, %v71_v0  ;;  %v29_v3 = vadd.f32 %v28_v2, %v27_v1 }
   0xf   :  { %30 = vadd.xlane.f32.xlu0 %v29_v3 }
  0x14   :  { %v26_v4 = vld [vmem:[#allocation2] sm:$0xff] }
  0x98   :  { %v31_v5 = vpop.xlane.xlu0 %30 }
  0x99   :  { %v32_v6 = vadd.f32 %v31_v5, %v26_v4 }
  0x9b   :  { %34 = vst.msk [vmem:[#allocation2] sm:$0xff] %vm24_vm0, %v32_v6 }
  0xa2   :  { %v38_v7 = vld [vmem:[#allocation2] sm:$0xff] }
  0xa3   :  { %v39_v8 = vmul.f32 0.00390625, %v38_v7 }
  0xa5   :  { %40 = vst.msk [vmem:[%s89_s1] sm:$0xff] %vm24_vm0, %v39_v8 }
  0xa6   :  { %45 = vsyncpa [#allocation4], 1 }

</bundles_post_ra>
